<compile_context>
chip_gen: v7x
topology: tpu7x:2x2x1
jax: 0.10.0
libtpu: 0.0.40
codegen_flags: <defaults>
</compile_context>

<pallas_src>
import functools

import jax
import jax.numpy as jnp
from jax.experimental import pallas as pl
from jax.experimental.pallas import tpu as pltpu

BN_EPS = 1e-05


# ---------------------------------------------------------------------------
# Pass 1: lane-dense per-row partial sums / sums-of-squares.
# Grid = (row_tiles, lane_tiles); the lane axis is the 'arbitrary' reduction
# axis, the (tr, SW) output blocks are revisited across it (P3 accumulator).
# ---------------------------------------------------------------------------
def _row_stats_kernel(x_ref, sum_ref, sq_ref, *, tl, sw, L, ragged_l):
    j = pl.program_id(1)

    @pl.when(j == 0)
    def _():
        sum_ref[...] = jnp.zeros_like(sum_ref)
        sq_ref[...] = jnp.zeros_like(sq_ref)

    x = x_ref[...].astype(jnp.float32)                    # (tr, tl)
    if ragged_l:
        # Zero the lanes past L in the (padded) tail block.
        col = jax.lax.broadcasted_iota(jnp.int32, x.shape, 1) + j * tl
        x = jnp.where(col < L, x, 0.0)

    tr = x.shape[0]
    s = jnp.zeros((tr, sw), jnp.float32)
    q = jnp.zeros((tr, sw), jnp.float32)
    for k in range(tl // sw):                             # static unroll
        xk = x[:, k * sw:(k + 1) * sw]                    # lane-aligned slice
        s = s + xk
        q = q + xk * xk
    sum_ref[...] += s                                     # (tr, sw) lane-dense
    sq_ref[...] += q


# ---------------------------------------------------------------------------
# Pass 2: elementwise normalize + affine, y = x * scale_row + shift_row.
# Fully 'parallel' grid; lane-dense (tr, tl) output blocks.
# ---------------------------------------------------------------------------
def _bn_apply_kernel(x_ref, scale_ref, shift_ref, o_ref):
    x = x_ref[...].astype(jnp.float32)
    o_ref[...] = (x * scale_ref[...] + shift_ref[...]).astype(o_ref.dtype)


def _choose_tiles(R, L, block_rows, block_cols,
                  max_block_bytes=8 * 1024 * 1024):
    """Tile sizes for a cdiv grid: tr multiple of 8 (or full R), tl multiple
    of 128 (or full L), byte-capped, with >=2 row tiles when R >= 16."""
    block_cols = max(128, (block_cols // 128) * 128)
    block_rows = max(8, (block_rows // 8) * 8)

    tl = L if L <= 128 else min(block_cols, (L // 128) * 128)
    if R <= 8:
        tr = R
    else:
        tr = min(block_rows, (R // 8) * 8)
        # Guarantee >= 2 'parallel' row tiles so pass 1 can use both of
        # v7x's TensorCores (its other axis is the 'arbitrary' reduction).
        if pl.cdiv(R, tr) < 2 and R >= 16:
            tr = max(8, ((R // 2) // 8) * 8)

    # Byte cap (keeps the per-step footprint under the VMEM budget).
    while tr * tl * 4 > max_block_bytes:
        if tl > 512:
            tl = max(128, (tl // 2) // 128 * 128)
        elif tr > 8:
            tr = max(8, (tr // 2) // 8 * 8)
        else:
            break
    return tr, tl


def sync_batch_norm(x, gamma, beta, *, eps=BN_EPS,
                    block_rows=256, block_cols=4096):
    """Training-mode SyncBatchNorm forward. x: (N, C, H, W)."""
    N, C, H, W = x.shape
    R = N * C
    L = H * W

    # Free, contiguous reshape: row r = n*C + c, col = h*W + w.
    x2 = x.reshape(R, L)

    tr, tl = _choose_tiles(R, L, block_rows, block_cols)
    sw = 128 if tl >= 128 else tl          # lane width of the stats outputs
    grid = (pl.cdiv(R, tr), pl.cdiv(L, tl))
    ragged_l = (L % tl) != 0

    block_bytes = tr * tl * 4
    # Pass 2 footprint ~ 4 x block (x + y, double-buffered) + tiny scale/shift;
    # keep the limit <= 48 MiB so there's headroom on v7x's 64 MiB VMEM.
    vmem_limit = int(min(48 * 1024 * 1024,
                         max(32 * 1024 * 1024, 6 * block_bytes)))

    # --- pass 1: lane-dense per-row partial sum / sumsq (one read of x) -----
    stats_kernel = functools.partial(
        _row_stats_kernel, tl=tl, sw=sw, L=L, ragged_l=ragged_l)
    row_sum, row_sq = pl.pallas_call(
        stats_kernel,
        out_shape=(jax.ShapeDtypeStruct((R, sw), jnp.float32),
                   jax.ShapeDtypeStruct((R, sw), jnp.float32)),
        grid=grid,
        in_specs=[pl.BlockSpec((tr, tl), lambda i, j: (i, j))],
        out_specs=(pl.BlockSpec((tr, sw), lambda i, j: (i, 0)),
                   pl.BlockSpec((tr, sw), lambda i, j: (i, 0))),
        compiler_params=pltpu.CompilerParams(
            dimension_semantics=("parallel", "arbitrary"),
            vmem_limit_bytes=vmem_limit),
    )(x2)

    # --- tiny O(N*C) combine: channel stats -> per-row scale/shift ----------
    count = jnp.float32(N * H * W)
    ch_sum = row_sum.sum(axis=1).reshape(N, C).sum(axis=0)   # (C,)
    ch_sq = row_sq.sum(axis=1).reshape(N, C).sum(axis=0)     # (C,)
    # TODO(synk): psum(ch_sum, ch_sq, count) across replicas for true SyncBN.
    mean = ch_sum / count
    # Biased variance via E[x^2] - mean^2, clamped at 0 against cancellation.
    var = jnp.maximum(ch_sq / count - mean * mean, 0.0)
    inv = jax.lax.rsqrt(var + eps)
    scale_c = gamma.astype(jnp.float32) * inv                # (C,)
    shift_c = beta.astype(jnp.float32) - mean * scale_c      # (C,)
    scale_r = jnp.tile(scale_c, N).reshape(R, 1)             # row r -> r % C
    shift_r = jnp.tile(shift_c, N).reshape(R, 1)

    # --- pass 2: normalize + affine (one streamed read, one write) ----------
    y2 = pl.pallas_call(
        _bn_apply_kernel,
        out_shape=jax.ShapeDtypeStruct((R, L), x.dtype),
        grid=grid,
        in_specs=[pl.BlockSpec((tr, tl), lambda i, j: (i, j)),
                  pl.BlockSpec((tr, 1), lambda i, j: (i, 0)),
                  pl.BlockSpec((tr, 1), lambda i, j: (i, 0))],
        out_specs=pl.BlockSpec((tr, tl), lambda i, j: (i, j)),
        compiler_params=pltpu.CompilerParams(
            dimension_semantics=("parallel", "parallel"),
            vmem_limit_bytes=vmem_limit),
    )(x2, scale_r, shift_r)

    return y2.reshape(N, C, H, W)


# ---------------------------------------------------------------------------
# Pure-JAX reference (training-mode BatchNorm2d == single-device SyncBN).
# ---------------------------------------------------------------------------
def reference(x, gamma, beta, eps=BN_EPS):
    mean = jnp.mean(x, axis=(0, 2, 3), keepdims=True)
    var = jnp.mean((x - mean) ** 2, axis=(0, 2, 3), keepdims=True)
    return ((x - mean) * jax.lax.rsqrt(var + eps)
            * gamma.reshape(1, -1, 1, 1) + beta.reshape(1, -1, 1, 1))


if __name__ == "__main__":
    key = jax.random.PRNGKey(0)
    kx, kg, kb, kx2, kx3 = jax.random.split(key, 5)

    # One jit fuses the tiny inter-pass combine ops with the pallas_calls.
    bn = jax.jit(sync_batch_norm,
                 static_argnames=("eps", "block_rows", "block_cols"))

    # SyncBatchNorm(4) on a (2, 4, 16, 16) input.
    N, C, H, W = 2, 4, 16, 16
    x = jax.random.normal(kx, (N, C, H, W), jnp.float32)
    gamma = 1.0 + 0.1 * jax.random.normal(kg, (C,), jnp.float32)  # bn.weight
    beta = 0.1 * jax.random.normal(kb, (C,), jnp.float32)         # bn.bias

    ref = reference(x, gamma, beta)
    out = jax.block_until_ready(bn(x, gamma, beta))
    assert out.shape == (N, C, H, W)
    assert jnp.allclose(out, ref, rtol=1e-4, atol=1e-4), \
        float(jnp.max(jnp.abs(out - ref)))

    # Small tiles: multi-tile lane accumulation + fully parallel apply grid.
    out_tiled = jax.block_until_ready(
        bn(x, gamma, beta, block_rows=8, block_cols=128))
    assert jnp.allclose(out_tiled, ref, rtol=1e-4, atol=1e-4), \
        float(jnp.max(jnp.abs(out_tiled - ref)))

    # More (n, c) rows: multiple 'parallel' row tiles, both explicit and via
    # the automatic >=2-row-tile (v7x megacore) heuristic at defaults.
    N2, C2 = 4, 16
    x2 = jax.random.normal(kx2, (N2, C2, 16, 16), jnp.float32)
    g2 = jnp.ones((C2,), jnp.float32)
    b2 = jnp.zeros((C2,), jnp.float32)
    ref2 = reference(x2, g2, b2)
    out2 = jax.block_until_ready(bn(x2, g2, b2, block_rows=16, block_cols=128))
    assert jnp.allclose(out2, ref2, rtol=1e-4, atol=1e-4), \
        float(jnp.max(jnp.abs(out2 - ref2)))
    out2b = jax.block_until_ready(bn(x2, g2, b2))
    assert jnp.allclose(out2b, ref2, rtol=1e-4, atol=1e-4), \
        float(jnp.max(jnp.abs(out2b - ref2)))

    # Ragged shape: R=10 (partial row block, clipped stores) and L=180
    # (cdiv lane grid + in-kernel tail mask); non-zero mean data.
    N3, C3, H3, W3 = 2, 5, 9, 20
    x3 = 0.5 + jax.random.normal(kx3, (N3, C3, H3, W3), jnp.float32)
    g3 = 1.0 + 0.05 * jnp.arange(C3, dtype=jnp.float32)
    b3 = 0.1 * jnp.arange(C3, dtype=jnp.float32)
    ref3 = reference(x3, g3, b3)
    out3 = jax.block_until_ready(bn(x3, g3, b3))
    assert jnp.allclose(out3, ref3, rtol=1e-4, atol=1e-4), \
        float(jnp.max(jnp.abs(out3 - ref3)))

    print("KERNEL_OK")
</pallas_src>

<mosaic_0001>
module attributes {stable_mosaic.version = 11 : i64} {
  func.func @_row_stats_kernel(%arg0: i32, %arg1: i32, %arg2: memref<8x256xf32, #tpu.memory_space<vmem>>, %arg3: memref<8x128xf32, #tpu.memory_space<vmem>>, %arg4: memref<8x128xf32, #tpu.memory_space<vmem>>) attributes {dimension_semantics = [#tpu.dimension_semantics<parallel>, #tpu.dimension_semantics<arbitrary>], iteration_bounds = array<i64: 1, 1>, scalar_prefetch = 0 : i64, scratch_operands = 0 : i64, tpu.core_type = #tpu.core_type<tc>, window_params = [{transform_indices = @transform_0, window_bounds = array<i64: 8, 256>}, {transform_indices = @transform_1, window_bounds = array<i64: 8, 128>}, {transform_indices = @transform_2, window_bounds = array<i64: 8, 128>}]} {
    %c0_i32 = arith.constant 0 : i32
    %0 = arith.cmpi eq, %arg1, %c0_i32 : i32
    %1 = arith.extui %0 : i1 to i32
    %c0_i32_0 = arith.constant 0 : i32
    %2 = arith.cmpi ne, %1, %c0_i32_0 : i32
    scf.if %2 {
      %cst_11 = arith.constant 0.000000e+00 : f32
      %20 = vector.broadcast %cst_11 : f32 to vector<8x128xf32>
      %c0_12 = arith.constant 0 : index
      %c0_13 = arith.constant 0 : index
      %21 = vector.load %arg3[%c0_12, %c0_13] : memref<8x128xf32, #tpu.memory_space<vmem>>, vector<8x128xf32>
      tpu.vector_store %arg3[%c0_12, %c0_13], %20 {strides = array<i32>} : memref<8x128xf32, #tpu.memory_space<vmem>>, vector<8x128xf32>,
      %cst_14 = arith.constant 0.000000e+00 : f32
      %22 = vector.broadcast %cst_14 : f32 to vector<8x128xf32>
      %c0_15 = arith.constant 0 : index
      %c0_16 = arith.constant 0 : index
      %23 = vector.load %arg4[%c0_15, %c0_16] : memref<8x128xf32, #tpu.memory_space<vmem>>, vector<8x128xf32>
      tpu.vector_store %arg4[%c0_15, %c0_16], %22 {strides = array<i32>} : memref<8x128xf32, #tpu.memory_space<vmem>>, vector<8x128xf32>,
    } else {
    }
    %c0 = arith.constant 0 : index
    %c0_1 = arith.constant 0 : index
    %3 = vector.load %arg2[%c0, %c0_1] : memref<8x256xf32, #tpu.memory_space<vmem>>, vector<8x256xf32>
    %cst = arith.constant 0.000000e+00 : f32
    %4 = vector.broadcast %cst : f32 to vector<8x128xf32>
    %cst_2 = arith.constant 0.000000e+00 : f32
    %5 = vector.broadcast %cst_2 : f32 to vector<8x128xf32>
    %6 = vector.extract_strided_slice %3 {offsets = [0, 0], sizes = [8, 128], strides = [1, 1]} : vector<8x256xf32> to vector<8x128xf32>
    %7 = arith.addf %4, %6 : vector<8x128xf32>
    %8 = arith.mulf %6, %6 : vector<8x128xf32>
    %9 = arith.addf %5, %8 : vector<8x128xf32>
    %10 = vector.extract_strided_slice %3 {offsets = [0, 128], sizes = [8, 128], strides = [1, 1]} : vector<8x256xf32> to vector<8x128xf32>
    %11 = arith.addf %7, %10 : vector<8x128xf32>
    %12 = arith.mulf %10, %10 : vector<8x128xf32>
    %13 = arith.addf %9, %12 : vector<8x128xf32>
    %c0_3 = arith.constant 0 : index
    %c0_4 = arith.constant 0 : index
    %14 = vector.load %arg3[%c0_3, %c0_4] : memref<8x128xf32, #tpu.memory_space<vmem>>, vector<8x128xf32>
    %15 = arith.addf %14, %11 : vector<8x128xf32>
    %c0_5 = arith.constant 0 : index
    %c0_6 = arith.constant 0 : index
    %16 = vector.load %arg3[%c0_5, %c0_6] : memref<8x128xf32, #tpu.memory_space<vmem>>, vector<8x128xf32>
    tpu.vector_store %arg3[%c0_5, %c0_6], %15 {strides = array<i32>} : memref<8x128xf32, #tpu.memory_space<vmem>>, vector<8x128xf32>,
    %c0_7 = arith.constant 0 : index
    %c0_8 = arith.constant 0 : index
    %17 = vector.load %arg4[%c0_7, %c0_8] : memref<8x128xf32, #tpu.memory_space<vmem>>, vector<8x128xf32>
    %18 = arith.addf %17, %13 : vector<8x128xf32>
    %c0_9 = arith.constant 0 : index
    %c0_10 = arith.constant 0 : index
    %19 = vector.load %arg4[%c0_9, %c0_10] : memref<8x128xf32, #tpu.memory_space<vmem>>, vector<8x128xf32>
    tpu.vector_store %arg4[%c0_9, %c0_10], %18 {strides = array<i32>} : memref<8x128xf32, #tpu.memory_space<vmem>>, vector<8x128xf32>,
    return
  }
  func.func @transform_0(%arg0: i32, %arg1: i32) -> (i32, i32) {
    %c0_i32 = arith.constant 0 : i32
    return %arg0, %arg1 : i32, i32
  }
  func.func @transform_1(%arg0: i32, %arg1: i32) -> (i32, i32) {
    %c0_i32 = arith.constant 0 : i32
    %c0_i32_0 = arith.constant 0 : i32
    return %arg0, %c0_i32 : i32, i32
  }
  func.func @transform_2(%arg0: i32, %arg1: i32) -> (i32, i32) {
    %c0_i32 = arith.constant 0 : i32
    %c0_i32_0 = arith.constant 0 : i32
    return %arg0, %c0_i32 : i32, i32
  }
}

module attributes {stable_mosaic.version = 11 : i64} {
  func.func @_bn_apply_kernel(%arg0: i32, %arg1: i32, %arg2: memref<8x256xf32, #tpu.memory_space<vmem>>, %arg3: memref<8x1xf32, #tpu.memory_space<vmem>>, %arg4: memref<8x1xf32, #tpu.memory_space<vmem>>, %arg5: memref<8x256xf32, #tpu.memory_space<vmem>>) attributes {dimension_semantics = [#tpu.dimension_semantics<parallel>, #tpu.dimension_semantics<parallel>], iteration_bounds = array<i64: 1, 1>, scalar_prefetch = 0 : i64, scratch_operands = 0 : i64, tpu.core_type = #tpu.core_type<tc>, window_params = [{transform_indices = @transform_0, window_bounds = array<i64: 8, 256>}, {transform_indices = @transform_1, window_bounds = array<i64: 8, 1>}, {transform_indices = @transform_2, window_bounds = array<i64: 8, 1>}, {transform_indices = @transform_3, window_bounds = array<i64: 8, 256>}]} {
    %c0 = arith.constant 0 : index
    %c0_0 = arith.constant 0 : index
    %0 = vector.load %arg2[%c0, %c0_0] : memref<8x256xf32, #tpu.memory_space<vmem>>, vector<8x256xf32>
    %c0_1 = arith.constant 0 : index
    %c0_2 = arith.constant 0 : index
    %1 = vector.load %arg3[%c0_1, %c0_2] : memref<8x1xf32, #tpu.memory_space<vmem>>, vector<8x1xf32>
    %2 = vector.broadcast %1 : vector<8x1xf32> to vector<8x256xf32>
    %3 = arith.mulf %0, %2 : vector<8x256xf32>
    %c0_3 = arith.constant 0 : index
    %c0_4 = arith.constant 0 : index
    %4 = vector.load %arg4[%c0_3, %c0_4] : memref<8x1xf32, #tpu.memory_space<vmem>>, vector<8x1xf32>
    %5 = vector.broadcast %4 : vector<8x1xf32> to vector<8x256xf32>
    %6 = arith.addf %3, %5 : vector<8x256xf32>
    %c0_5 = arith.constant 0 : index
    %c0_6 = arith.constant 0 : index
    %7 = vector.load %arg5[%c0_5, %c0_6] : memref<8x256xf32, #tpu.memory_space<vmem>>, vector<8x256xf32>
    tpu.vector_store %arg5[%c0_5, %c0_6], %6 {strides = array<i32>} : memref<8x256xf32, #tpu.memory_space<vmem>>, vector<8x256xf32>,
    return
  }
  func.func @transform_0(%arg0: i32, %arg1: i32) -> (i32, i32) {
    %c0_i32 = arith.constant 0 : i32
    return %arg0, %arg1 : i32, i32
  }
  func.func @transform_1(%arg0: i32, %arg1: i32) -> (i32, i32) {
    %c0_i32 = arith.constant 0 : i32
    %c0_i32_0 = arith.constant 0 : i32
    return %arg0, %c0_i32 : i32, i32
  }
  func.func @transform_2(%arg0: i32, %arg1: i32) -> (i32, i32) {
    %c0_i32 = arith.constant 0 : i32
    %c0_i32_0 = arith.constant 0 : i32
    return %arg0, %c0_i32 : i32, i32
  }
  func.func @transform_3(%arg0: i32, %arg1: i32) -> (i32, i32) {
    %c0_i32 = arith.constant 0 : i32
    return %arg0, %arg1 : i32, i32
  }
}

</mosaic_0001>

<bundles_post_ra>
// kernel: tile.0
= control target key start
LH: loop header
LB: loop body
LE: loop exit
PB: predicated region body
PF: predicated region fallthrough
CT: control target
= control target key end

     0   :  { %s34_s8 = smov 125   ;;  %vm7_vm0 = vcmask 7168   ;;  %s35_s11 = smov 126   ;;  %s61_s0 = inlined_call_operand.vmem [shape: f32[2,4], index: 0, kind: input, shape index: {}]   ;;  %s62_s1 = inlined_call_operand.vmem [shape: f32[8,1], index: 1, kind: output, shape index: {}]  }
   0x1   :  { %v4_v0 = vld [vmem:[%s61_s0] sm:$0x3]  ;;  %s33_s0 = smov 127  }
   0x2   :  { %5 = vst [vmem:[#allocation0] sm:$0x3] %v4_v0 }
   0x9   :  { %v9_v1 = vld [vmem:[#allocation0] sm:$0x3]  }
   0xa   :  { %v21_v2 = vld [vmem:[#allocation0] sm:$0x3]   ;;  %10 = vrot.lane.b32.xlu0 %v9_v1, %s33_s0 }
   0xb   :  { %22 = vrot.lane.b32.xlu1 %v21_v2, %s34_s8  ;;  %v6_v3 = vld [vmem:[#allocation0] sm:$0x3]  }
   0xc   :  { %v15_v4 = vld [vmem:[#allocation0] sm:$0x3]   ;;  %8 = vst.msk [vmem:[%s62_s1] ss:$4 sm:$0x3] %vm7_vm0, %v6_v3  }
   0xe   :  { %16 = vrot.lane.b32.xlu0 %v15_v4, %s35_s11 }
  0x7c   :  { %v11_v5 = vpop.permute.xlu0 %10  }
  0x7d   :  { %v23_v6 = vpop.permute.xlu1 %22   ;;  %27 = vst.msk [vmem:[%s62_s1 + $0x1] ss:$4 sm:$0x3] %vm7_vm0, %v11_v5  }
  0x7e   :  { %29 = vst.msk [vmem:[%s62_s1 + $0x3] ss:$4 sm:$0x3] %vm7_vm0, %v23_v6  }
  0x80   :  { %v17_v7 = vpop.permute.xlu0 %16  }
  0x81   :  { %28 = vst.msk [vmem:[%s62_s1 + $0x2] ss:$4 sm:$0x3] %vm7_vm0, %v17_v7  }

// kernel: tile.18
= control target key start
LH: loop header
LB: loop body
LE: loop exit
PB: predicated region body
PF: predicated region fallthrough
CT: control target
= control target key end

     0   :  { %s22_s0 = inlined_call_operand.vmem [shape: f32[4], index: 0, kind: input, shape index: {}]   ;;  %s23_s1 = inlined_call_operand.vmem [shape: f32[2,4], index: 1, kind: output, shape index: {}]  }
   0x1   :  { %v4_v0 = vld [vmem:[%s22_s0] ss:$0 sm:$0xff] }
   0x2   :  { %5 = vst [vmem:[%s23_s1] sm:$0x3] %v4_v0 }

// kernel: sync_batch_norm.3
= control target key start
LH: loop header
LB: loop body
LE: loop exit
PB: predicated region body
PF: predicated region fallthrough
CT: control target
= control target key end

     0   :  { %v40_v0 = vmov 0   ;;  %s79_s1 = inlined_call_operand.vmem [shape: f32[8,1], index: 1, kind: input, shape index: {}]   ;;  %s80_s2 = inlined_call_operand.vmem [shape: f32[8,1], index: 2, kind: input, shape index: {}]   ;;  %s81_s0 = inlined_call_operand.vmem [shape: f32[8,256], index: 0, kind: input, shape index: {}]   ;;  %s82_s3 = inlined_call_operand.vmem [shape: f32[8,256], index: 3, kind: output, shape index: {}]  }
   0x1   :  { %39 = vset.pattern.permute.xlu0 %v40_v0  ;;  %v16_v1 = vld [vmem:[%s79_s1] sm:$0xff]  ;;  %v15_v5 = vld [vmem:[%s81_s0 + $0x8] sm:$0xff] }
   0x2   :  { %19 = vperm.xlu0 %39, %v16_v1   ;;  %v24_v2 = vld [vmem:[%s80_s2] sm:$0xff] }
   0x3   :  { %v14_v4 = vld [vmem:[%s81_s0] sm:$0xff] }
   0x6   :  { %27 = vperm.xlu0 %39, %v24_v2  }
  0x81   :  { %v20_v3 = vpop.permute.xlu0 %19 }
  0x82   :  { %v22_v6 = vmul.f32 %v20_v3, %v14_v4  ;;  %v23_v7 = vmul.f32 %v20_v3, %v15_v5 }
  0x85   :  { %v28_v8 = vpop.permute.xlu0 %27 }
  0x86   :  { %v30_v9 = vadd.f32 %v28_v8, %v22_v6  ;;  %v31_v10 = vadd.f32 %v28_v8, %v23_v7 }
  0x88   :  { %32 = vst [vmem:[%s82_s3] sm:$0xff] %v30_v9  ;;  %33 = vst [vmem:[%s82_s3 + $0x8] sm:$0xff] %v31_v10 }

// kernel: sync_batch_norm.2
= control target key start
LH: loop header
LB: loop body
LE: loop exit
PB: predicated region body
PF: predicated region fallthrough
CT: control target
= control target key end

     0   :  { %s66_s0 = inlined_call_operand.vmem [shape: f32[8,256], index: 0, kind: input, shape index: {}]   ;;  %s67_s1 = inlined_call_operand.vmem [shape: f32[8,128], index: 1, kind: output, shape index: {0}]   ;;  %s68_s2 = inlined_call_operand.vmem [shape: f32[8,128], index: 2, kind: output, shape index: {1}]  }
   0x1   :  { %v16_v0 = vld [vmem:[%s66_s0] sm:$0xff]  ;;  %v17_v1 = vld [vmem:[%s66_s0 + $0x8] sm:$0xff] }
   0x2   :  { %v21_v2 = vadd.f32 %v17_v1, %v16_v0  ;;  %v19_v3 = vmul.f32 %v16_v0, %v16_v0  ;;  %v22_v4 = vmul.f32 %v17_v1, %v17_v1 }
   0x4   :  { %v23_v5 = vadd.f32 %v22_v4, %v19_v3  ;;  %26 = vst [vmem:[%s67_s1] sm:$0xff] %v21_v2 }
   0x6   :  { %29 = vst [vmem:[%s68_s2] sm:$0xff] %v23_v5 }

</bundles_post_ra>
